<compile_context>
chip_gen: v7x
topology: tpu7x:2x2x1
jax: 0.10.0
libtpu: 0.0.40
codegen_flags: <defaults>
</compile_context>

<pallas_src>
import math

import jax
import jax.numpy as jnp
from jax import lax
from jax.experimental import pallas as pl
from jax.experimental.pallas import tpu as pltpu


LANE = 128          # TPU lane width: packed output width is a multiple of this.
SUBLANE = 8         # row tiles must be a multiple of the sublane count.
MAX_ROW_TILE = 2048 # packed rows per grid step (~3 MiB double-buffered VMEM, v7x-safe)
MIN_SPLIT_ROWS = 512  # don't split rows across TensorCores below this per-step tile


def _temporal_decay_kernel(d_ref, wn_ref, bn_ref, o_ref):
    # d_ref:  (row_tile, K)   packed rows of time-deltas, streamed
    # wn_ref: (Hp, K)         block-diagonal -W, resident across the grid
    # bn_ref: (1, Hp)         tiled -b, resident across the grid
    # o_ref:  (row_tile, Hp)  gamma, fully lane-dense (no padding columns)
    #
    # x = d @ (-W_blk).T + (-b)   ->   exp(-relu(d @ W.T + b)) == exp(min(x, 0))
    x = lax.dot_general(
        d_ref[...], wn_ref[...],
        dimension_numbers=(((1,), (1,)), ((), ())),   # contract packed feature dim
        preferred_element_type=jnp.float32,
    )
    x = x + bn_ref[...]                               # broadcast bias over rows
    o_ref[...] = jnp.exp(jnp.minimum(x, 0.0)).astype(o_ref.dtype)


def prepare_temporal_decay_params(W, b, *, lane=LANE, dtype=jnp.float32):
    """One-time (init) param prep: negate and pack -W block-diagonally.

    pack = smallest P with (P*H) % lane == 0.  Each kernel output row then
    holds `pack` real gamma rows, so stores are lane-dense with ZERO padding.
    Returns (Wn_pack (P*H, P*D), bn_pack (1, P*H), pack).
    """
    H, D = W.shape
    pack = lane // math.gcd(H, lane)
    Hp = pack * H
    K = pack * D
    Wneg = (-W).astype(dtype)
    Wn = jnp.zeros((Hp, K), dtype)
    for p in range(pack):                      # init-time only
        Wn = Wn.at[p * H:(p + 1) * H, p * D:(p + 1) * D].set(Wneg)
    bn = jnp.tile((-b).astype(dtype).reshape(1, H), (1, pack))
    return Wn, bn, pack


def _choose_row_tile(m_rows, max_row_tile):
    """Pick (row_tile, num_steps) for `m_rows` packed rows.

    Bigger tiles amortize the ~0.35us/grid-step overhead; >=2 even steps let
    v7x's two TensorCores split the rows, but only when each half stays above
    the measured efficient-tile floor.  Tiny inputs collapse to one step.
    """
    m8 = max(SUBLANE, pl.cdiv(m_rows, SUBLANE) * SUBLANE)
    if m8 <= max_row_tile:
        if m8 >= 2 * MIN_SPLIT_ROWS and (m8 // 2) % SUBLANE == 0:
            return m8 // 2, 2
        return m8, 1
    steps = pl.cdiv(m8, max_row_tile)
    steps += steps % 2                         # even step count for v7x balance
    row_tile = pl.cdiv(pl.cdiv(m8, steps), SUBLANE) * SUBLANE
    steps = pl.cdiv(m8, row_tile)
    return row_tile, steps


def temporal_decay(d, Wn_pack, bn_pack, pack, rnn_hid_size, *,
                   max_row_tile=MAX_ROW_TILE):
    """d: (..., D) non-negative time deltas -> gamma (..., rnn_hid_size).

    All leading dims (time, batch, ...) are flattened, packed `pack` rows per
    kernel row, and processed in a single pallas_call so launch overhead is
    paid once per sequence, not once per RNN step.
    """
    lead = d.shape[:-1]
    D = d.shape[-1]
    N = math.prod(lead) if lead else 1
    Hp, K = Wn_pack.shape
    assert K == pack * D and Hp == pack * rnn_hid_size

    d2 = d.reshape(N, D)
    if d2.dtype != Wn_pack.dtype:
        d2 = d2.astype(Wn_pack.dtype)

    # Pack `pack` consecutive rows into one lane-dense kernel row.
    Npack = pl.cdiv(N, pack) * pack
    if Npack != N:                            # only for awkward N; demo skips this
        d2 = jnp.pad(d2, ((0, Npack - N), (0, 0)))
    M = Npack // pack
    d2 = d2.reshape(M, K)

    row_tile, steps = _choose_row_tile(M, max_row_tile)
    Mp = row_tile * steps
    if Mp != M:                               # only for awkward N; demo skips this
        d2 = jnp.pad(d2, ((0, Mp - M), (0, 0)))

    cost = pl.CostEstimate(
        flops=2 * Mp * K * Hp,
        transcendentals=Mp * Hp,
        bytes_accessed=4 * (Mp * K + Hp * K + Hp + Mp * Hp),
    )

    gamma = pl.pallas_call(
        _temporal_decay_kernel,
        out_shape=jax.ShapeDtypeStruct((Mp, Hp), d.dtype),
        grid_spec=pl.GridSpec(
            grid=(steps,),
            in_specs=[
                pl.BlockSpec((row_tile, K), lambda i: (i, 0)),   # streamed rows
                pl.BlockSpec((Hp, K), lambda i: (0, 0)),          # resident -W (block-diag)
                pl.BlockSpec((1, Hp), lambda i: (0, 0)),          # resident -b (tiled)
            ],
            out_specs=pl.BlockSpec((row_tile, Hp), lambda i: (i, 0)),
        ),
        compiler_params=pltpu.CompilerParams(
            dimension_semantics=("parallel",),   # rows shard across TCs on v7x
        ),
        cost_estimate=cost,
    )(d2, Wn_pack, bn_pack)

    # (Mp, pack*H) -> (Mp*pack, H) is a contiguous, copy-free reshape.
    gamma = gamma.reshape(Mp * pack, rnn_hid_size)
    if Mp * pack != N:
        gamma = gamma[:N]
    return gamma.reshape(*lead, rnn_hid_size)


def _reference(d, W, b):
    gamma = jnp.maximum(jnp.einsum("...d,hd->...h", d, W) + b, 0.0)
    return jnp.exp(-gamma)


if __name__ == "__main__":
    # Shapes implied by the module: input_size features -> rnn_hid_size gammas,
    # evaluated for every (time step, batch row) of a BRITS sequence.
    seq_len, batch, input_size, rnn_hid_size = 16, 8, 16, 32

    key = jax.random.PRNGKey(0)
    k_d, k_w, k_b = jax.random.split(key, 3)

    # Deterministic param init mirroring reset_parameters():
    # uniform(-stdv, stdv) with stdv = 1/sqrt(rnn_hid_size)
    stdv = 1.0 / math.sqrt(rnn_hid_size)
    W = jax.random.uniform(k_w, (rnn_hid_size, input_size),
                           minval=-stdv, maxval=stdv, dtype=jnp.float32)
    b = jax.random.uniform(k_b, (rnn_hid_size,),
                           minval=-stdv, maxval=stdv, dtype=jnp.float32)

    # d in BRITS is a non-negative time-delta tensor; one call covers the
    # whole (seq_len, batch) grid of the sequence.
    d_seq = jnp.abs(jax.random.normal(k_d, (seq_len, batch, input_size),
                                      dtype=jnp.float32))

    # One-time parameter prep (negate + block-diagonal pack), as at init.
    Wn_pack, bn_pack, pack = prepare_temporal_decay_params(W, b)

    out = temporal_decay(d_seq, Wn_pack, bn_pack, pack, rnn_hid_size)
    out = jax.block_until_ready(out)

    ref = _reference(d_seq, W, b)
    assert out.shape == (seq_len, batch, rnn_hid_size)
    assert jnp.allclose(out, ref, atol=1e-5, rtol=1e-5), "mismatch vs reference"

    print("KERNEL_OK")
</pallas_src>

<mosaic_0001>
module attributes {stable_mosaic.version = 11 : i64} {
  func.func @_temporal_decay_kernel(%arg0: i32, %arg1: memref<32x64xf32, #tpu.memory_space<vmem>>, %arg2: memref<128x64xf32, #tpu.memory_space<vmem>>, %arg3: memref<1x128xf32, #tpu.memory_space<vmem>>, %arg4: memref<32x128xf32, #tpu.memory_space<vmem>>) attributes {dimension_semantics = [#tpu.dimension_semantics<parallel>], iteration_bounds = array<i64: 1>, scalar_prefetch = 0 : i64, scratch_operands = 0 : i64, tpu.core_type = #tpu.core_type<tc>, window_params = [{transform_indices = @transform_0, window_bounds = array<i64: 32, 64>}, {pipeline_mode = #tpu.pipeline_mode<synchronous>, transform_indices = @transform_1, window_bounds = array<i64: 128, 64>}, {pipeline_mode = #tpu.pipeline_mode<synchronous>, transform_indices = @transform_2, window_bounds = array<i64: 1, 128>}, {transform_indices = @transform_3, window_bounds = array<i64: 32, 128>}]} {
    %c0 = arith.constant 0 : index
    %c0_0 = arith.constant 0 : index
    %0 = vector.load %arg1[%c0, %c0_0] : memref<32x64xf32, #tpu.memory_space<vmem>>, vector<32x64xf32>
    %c0_1 = arith.constant 0 : index
    %c0_2 = arith.constant 0 : index
    %1 = vector.load %arg2[%c0_1, %c0_2] : memref<128x64xf32, #tpu.memory_space<vmem>>, vector<128x64xf32>
    %cst = arith.constant dense<0.000000e+00> : vector<32x128xf32>
    %2 = tpu.matmul %0, %1, %cst {dimension_numbers = #tpu.dot_dimension_numbers<[1], [1], [0], [0], [0, 0, 1, 0], [], []>} : vector<32x64xf32>, vector<128x64xf32>, vector<32x128xf32> -> vector<32x128xf32>
    %c0_3 = arith.constant 0 : index
    %c0_4 = arith.constant 0 : index
    %3 = vector.load %arg3[%c0_3, %c0_4] : memref<1x128xf32, #tpu.memory_space<vmem>>, vector<1x128xf32>
    %4 = vector.broadcast %3 : vector<1x128xf32> to vector<32x128xf32>
    %5 = arith.addf %2, %4 : vector<32x128xf32>
    %cst_5 = arith.constant 0.000000e+00 : f32
    %6 = vector.broadcast %cst_5 : f32 to vector<32x128xf32>
    %7 = arith.minimumf %5, %6 : vector<32x128xf32>
    %8 = math.exp %7 : vector<32x128xf32>
    %c0_6 = arith.constant 0 : index
    %c0_7 = arith.constant 0 : index
    %9 = vector.load %arg4[%c0_6, %c0_7] : memref<32x128xf32, #tpu.memory_space<vmem>>, vector<32x128xf32>
    tpu.vector_store %arg4[%c0_6, %c0_7], %8 {strides = array<i32>} : memref<32x128xf32, #tpu.memory_space<vmem>>, vector<32x128xf32>,
    return
  }
  func.func @transform_0(%arg0: i32) -> (i32, i32) {
    %c0_i32 = arith.constant 0 : i32
    %c0_i32_0 = arith.constant 0 : i32
    return %arg0, %c0_i32 : i32, i32
  }
  func.func @transform_1(%arg0: i32) -> (i32, i32) {
    %c0_i32 = arith.constant 0 : i32
    %c0_i32_0 = arith.constant 0 : i32
    %c0_i32_1 = arith.constant 0 : i32
    return %c0_i32, %c0_i32_0 : i32, i32
  }
  func.func @transform_2(%arg0: i32) -> (i32, i32) {
    %c0_i32 = arith.constant 0 : i32
    %c0_i32_0 = arith.constant 0 : i32
    %c0_i32_1 = arith.constant 0 : i32
    return %c0_i32, %c0_i32_0 : i32, i32
  }
  func.func @transform_3(%arg0: i32) -> (i32, i32) {
    %c0_i32 = arith.constant 0 : i32
    %c0_i32_0 = arith.constant 0 : i32
    return %arg0, %c0_i32 : i32, i32
  }
}

</mosaic_0001>

<bundles_post_ra>
// kernel: tpu_custom_call.1
= control target key start
LH: loop header
LB: loop body
LE: loop exit
PB: predicated region body
PF: predicated region fallthrough
CT: control target
= control target key end

     0   :  { %vm42_vm0 = vcmask 523264   ;;  %s570_s0 = inlined_call_operand.vmem [shape: f32[32,64], index: 0, kind: input, shape index: {}]   ;;  %s571_s1 = inlined_call_operand.vmem [shape: f32[128,64], index: 1, kind: input, shape index: {}]   ;;  %s572_s2 = inlined_call_operand.vmem [shape: f32[1,128], index: 2, kind: input, shape index: {}]   ;;  %s573_s3 = inlined_call_operand.hbm [shape: f32[32,128], index: 3, kind: output, shape index: {}]  }
   0x1   :  { %v19_v0 = vld [vmem:[%s571_s1] sm:$0xff]  ;;  %v20_v1 = vld [vmem:[%s571_s1 + $0x8] sm:$0xff]  ;;  %v21_v2 = vld [vmem:[%s571_s1 + $0x10] sm:$0xff] }
   0x2   :  { %v299_v3 = vpack.c.bf16 %v20_v1, %v19_v0  ;;  %vm432_vm1 = vmpackc.low %vm42_vm0, %vm42_vm0  ;;  %v22_v5 = vld [vmem:[%s571_s1 + $0x18] sm:$0xff]  ;;  %v15_v7 = vld [vmem:[%s570_s0] sm:$0xff] }
   0x3   :  { %v305_v6 = vpack.c.bf16 %v22_v5, %v21_v2  ;;  %v23_v8 = vld [vmem:[%s571_s1 + $0x20] sm:$0xff]  ;;  %v24_v9 = vld [vmem:[%s571_s1 + $0x28] sm:$0xff]  ;;  %293 = vmatprep.mubr.msk.f32.mxu0 %vm42_vm0, %v15_v7  ;;  %v17_v10 = vld [vmem:[%s570_s0 + $0x10] sm:$0xff] }
   0x4   :  { %301 = vmatprep.subr.msk.bf16.mxu0 %vm432_vm1, %v299_v3  ;;  %347 = vmatprep.subr.msk.bf16.mxu1 %vm432_vm1, %v299_v3 }
   0x5   :  { %304 = vmatpush3.bf16.xpose.msk.msra.mxu0 %vm432_vm1, %v299_v3  ;;  %355 = vmatpush3.bf16.xpose.msk.msra.mxu1 %vm432_vm1, %v299_v3 }
   0x6   :  { %307 = vmatprep.subr.msk.bf16.mxu0 %vm432_vm1, %v305_v6  ;;  %348 = vmatprep.subr.msk.bf16.mxu1 %vm432_vm1, %v305_v6 }
   0x7   :  { %296 = vmatprep.mubr.msk.f32.mxu1 %vm42_vm0, %v17_v10 }
   0x8   :  { %8 = vsyncpa [#allocation3], 0  ;;  %v311_v11 = vpack.c.bf16 %v24_v9, %v23_v8  ;;  %v25_v12 = vld [vmem:[%s571_s1 + $0x30] sm:$0xff]  ;;  %v26_v13 = vld [vmem:[%s571_s1 + $0x38] sm:$0xff] }
   0x9   :  { %v317_v14 = vpack.c.bf16 %v26_v13, %v25_v12  ;;  %v27_v15 = vld [vmem:[%s571_s1 + $0x40] sm:$0xff]  ;;  %v28_v16 = vld [vmem:[%s571_s1 + $0x48] sm:$0xff]  ;;  %v29_v18 = vld [vmem:[%s571_s1 + $0x50] sm:$0xff] }
   0xa   :  { %v323_v17 = vpack.c.bf16 %v28_v16, %v27_v15  ;;  %v30_v19 = vld [vmem:[%s571_s1 + $0x58] sm:$0xff]  ;;  %v31_v21 = vld [vmem:[%s571_s1 + $0x60] sm:$0xff]  ;;  %v32_v22 = vld [vmem:[%s571_s1 + $0x68] sm:$0xff] }
   0xb   :  { %v329_v20 = vpack.c.bf16 %v30_v19, %v29_v18  ;;  %v335_v23 = vpack.c.bf16 %v32_v22, %v31_v21  ;;  %v33_v24 = vld [vmem:[%s571_s1 + $0x70] sm:$0xff]  ;;  %v34_v25 = vld [vmem:[%s571_s1 + $0x78] sm:$0xff]  ;;  %v16_v27 = vld [vmem:[%s570_s0 + $0x8] sm:$0xff] }
   0xc   :  { %v341_v26 = vpack.c.bf16 %v34_v25, %v33_v24  ;;  %v18_v28 = vld [vmem:[%s570_s0 + $0x18] sm:$0xff]  ;;  %v220_v29 = vld [vmem:[%s572_s2] ss:$0 sm:$0xff]  ;;  %s398_s0 = smov [#allocation2]  }
   0xd   :  { %310 = vmatpush3.bf16.xpose.msk.msra.mxu0 %vm432_vm1, %v305_v6  ;;  %356 = vmatpush3.bf16.xpose.msk.msra.mxu1 %vm432_vm1, %v305_v6  ;;  %s209_s2 = sshll.u32 %s398_s0, 4  ;;  %s210_s2 = int_to_ptr.vmem [resolvable:$true] %s209_s2 }
   0xe   :  { %313 = vmatprep.subr.msk.bf16.mxu0 %vm432_vm1, %v311_v11  ;;  %349 = vmatprep.subr.msk.bf16.mxu1 %vm432_vm1, %v311_v11  ;;  %s374_s26 = scalar_lea.vmem %s210_s2, 512  ;;  %p379_p1 = scmp.lt.s32.totalorder %s210_s2, %s210_s2 }
   0xf   :  { %p375_p0 = scmp.ne.s32.totalorder %s210_s2, %s374_s26  ;;  %p380_p2 = scmp.lt.s32.totalorder %s374_s26, %s374_s26 }
  0x11   :  { %p381_p3 = por %p380_p2, %p379_p1 }
  0x13   :  { %p382_p4 = pnand %p381_p3, %p375_p0 }
  0x15   :  { %316 = vmatpush3.bf16.xpose.msk.msra.mxu0 %vm432_vm1, %v311_v11  ;;  %357 = vmatpush3.bf16.xpose.msk.msra.mxu1 %vm432_vm1, %v311_v11 }
  0x16   :  { %319 = vmatprep.subr.msk.bf16.mxu0 %vm432_vm1, %v317_v14  ;;  %350 = vmatprep.subr.msk.bf16.mxu1 %vm432_vm1, %v317_v14 }
  0x1d   :  { %322 = vmatpush3.bf16.xpose.msk.msra.mxu0 %vm432_vm1, %v317_v14  ;;  %358 = vmatpush3.bf16.xpose.msk.msra.mxu1 %vm432_vm1, %v317_v14 }
  0x1e   :  { %325 = vmatprep.subr.msk.bf16.mxu0 %vm432_vm1, %v323_v17  ;;  %351 = vmatprep.subr.msk.bf16.mxu1 %vm432_vm1, %v323_v17 }
  0x25   :  { %328 = vmatpush3.bf16.xpose.msk.msra.mxu0 %vm432_vm1, %v323_v17  ;;  %359 = vmatpush3.bf16.xpose.msk.msra.mxu1 %vm432_vm1, %v323_v17 }
  0x26   :  { %331 = vmatprep.subr.msk.bf16.mxu0 %vm432_vm1, %v329_v20  ;;  %352 = vmatprep.subr.msk.bf16.mxu1 %vm432_vm1, %v329_v20 }
  0x2d   :  { %334 = vmatpush3.bf16.xpose.msk.msra.mxu0 %vm432_vm1, %v329_v20  ;;  %360 = vmatpush3.bf16.xpose.msk.msra.mxu1 %vm432_vm1, %v329_v20 }
  0x2e   :  { %337 = vmatprep.subr.msk.bf16.mxu0 %vm432_vm1, %v335_v23  ;;  %353 = vmatprep.subr.msk.bf16.mxu1 %vm432_vm1, %v335_v23 }
  0x35   :  { %340 = vmatpush3.bf16.xpose.msk.msra.mxu0 %vm432_vm1, %v335_v23  ;;  %361 = vmatpush3.bf16.xpose.msk.msra.mxu1 %vm432_vm1, %v335_v23 }
  0x36   :  { %343 = vmatprep.subr.msk.bf16.mxu0 %vm432_vm1, %v341_v26  ;;  %354 = vmatprep.subr.msk.bf16.mxu1 %vm432_vm1, %v341_v26 }
  0x3d   :  { %346 = vmatpush3.bf16.xpose.msk.msra.mxu0 %vm432_vm1, %v341_v26  ;;  %362 = vmatpush3.bf16.xpose.msk.msra.mxu1 %vm432_vm1, %v341_v26 }
  0x44   :  { %294 = vmatmul.mubr.msk.f32.vlgmr.msra.gmra.mrb[0].mxu0 %vm42_vm0, %v16_v27  ;;  %297 = vmatmul.mubr.msk.f32.vlgmr.msra.gmra.mrb[0].mxu1 %vm42_vm0, %v18_v28 }
 0x117   :  { %v295_v30 = vpop.f32.mrb[0].mxu0  ;;  %v298_v31 = vpop.f32.mrb[0].mxu1 }
 0x118   :  { %v175_v32 = vadd.f32 %v295_v30, %v220_v29  ;;  %v185_v33 = vadd.f32 %v298_v31, %v220_v29  ;;  %v169_v34 = vpop.f32.mrb[1].mxu0  ;;  %v179_v35 = vpop.f32.mrb[1].mxu1 }
 0x119   :  { %v170_v36 = vadd.f32 %v220_v29, %v169_v34  ;;  %v180_v37 = vadd.f32 %v220_v29, %v179_v35 }
 0x11a   :  { %v189_v38 = vmin.f32 %v175_v32, 0.0  ;;  %v191_v39 = vmin.f32 %v185_v33, 0.0 }
 0x11b   :  { %v188_v40 = vmin.f32 %v170_v36, 0.0  ;;  %v190_v41 = vmin.f32 %v180_v37, 0.0 }
 0x11c   :  { %v194_v42 = vmul.f32 1.442695, %v189_v38  ;;  %v198_v43 = vmul.f32 1.442695, %v191_v39 }
 0x11d   :  { %v192_v44 = vmul.f32 1.442695, %v188_v40  ;;  %v196_v45 = vmul.f32 1.442695, %v190_v41 }
 0x11e   :  { %366 = vpow2.f32 %v194_v42 }
 0x11f   :  { %368 = vpow2.f32 %v198_v43 }
 0x120   :  { %370 = vpow2.f32 %v192_v44 }
 0x121   :  { %372 = vpow2.f32 %v196_v45 }
 0x128   :  { %v367_v46 = vpop.eup %366 }
 0x129   :  { %v369_v47 = vpop.eup %368  ;;  %201 = vst [vmem:[#allocation2 + $0x8] sm:$0xff] %v367_v46 }
 0x12a   :  { %v371_v48 = vpop.eup %370  ;;  %203 = vst [vmem:[#allocation2 + $0x18] sm:$0xff] %v369_v47 }
 0x12b   :  { %v373_v49 = vpop.eup %372  ;;  %200 = vst [vmem:[#allocation2] sm:$0xff] %v371_v48 }
 0x12c   :  { %202 = vst [vmem:[#allocation2 + $0x10] sm:$0xff] %v373_v49 }
 0x12d   :  { %385 = shalt.err (!%p382_p4)
}
 0x12e   :  { %s386_s29 = scalar_lea.hbm %s573_s3, 512 }
 0x12f   :  { %p387_p5 = scmp.ne.s32.totalorder %s573_s3, %s386_s29  ;;  %p390_p6 = scmp.lt.u32.totalorder %s386_s29, %s573_s3 }
 0x131   :  { %p392_p7 = pnand %p390_p6, %p387_p5 }
 0x133   :  { %395 = shalt.err (!%p392_p7)
}
 0x134   :  { %s399_s7 = smov 128   ;;  %s400_s8 = smov 8  }
 0x135   :  { %215 = dma.vmem_to_hbm [thread:$0]  %s210_s2, 512, %s573_s3, [#allocation3], %s399_s7, %s399_s7, %s400_s8  }
 0x136   :  { %396 = dma.done.wait [#allocation3], 512  }
 0x137   :  { %397 = vsyncadd [#allocation3], 4294966784 }
 0x138   :  { %219 = vsyncpa [#allocation3], 1 }

</bundles_post_ra>
